<compile_context>
chip_gen: v5e
topology: v5e:2x2
jax: 0.10.0
libtpu: 0.0.40
codegen_flags: <defaults>
</compile_context>

<pallas_src>
import jax
import jax.numpy as jnp
from jax.experimental import pallas as pl
from jax.experimental.pallas import tpu as pltpu

_LANE = 128


def _noise_inject_kernel(img_ref, noise_ref, w_ref, out_ref):
    # img_ref/out_ref: (TB, TC, TL); noise_ref: (nTB, nTC, TL); w_ref: (1, TC, 1)
    # Compute in the promoted dtype, cast once at the store.
    out_ref[...] = (img_ref[...] + w_ref[...] * noise_ref[...]).astype(out_ref.dtype)


def _round_down(x, m):
    return (x // m) * m


def _vmem_budget():
    """Return (per-stream block budget, explicit scoped-VMEM limit) in bytes."""
    try:
        cap = int(pltpu.get_tpu_info().vmem_capacity_bytes)
    except Exception:
        cap = 64 << 20  # smallest physical VMEM among targeted generations (v7x)
    # 3 streams (image, noise, out) x 2 pipeline buffers <= ~37.5% of VMEM.
    per_stream = max(512 << 10, min(4 << 20, cap // 16))
    limit = min(cap * 3 // 4, 64 << 20)
    limit = max(limit, 6 * per_stream + (4 << 20))  # always >= footprint + headroom
    return per_stream, int(limit)


def _select_tiles(N, C, L, itemsize, sub, budget):
    """Pick (TB, TC, TL): lane-dense, VMEM-budgeted, full-extent-preferring."""
    min_tc = C if C < sub else sub
    # 1) Lane axis: prefer the full extent (one contiguous HBM run per row).
    if L <= _LANE or min_tc * L * itemsize <= budget:
        TL = L
    else:
        TL = max(_LANE, _round_down(budget // (min_tc * itemsize), _LANE))
        TL = min(TL, _round_down(L, _LANE))
    # 2) Channel axis: full C if it fits, else a sublane-aligned chunk
    #    (ragged last block via cdiv is fine; block_shape stays aligned).
    if C * TL * itemsize <= budget:
        TC = C
    else:
        TC = max(sub, _round_down(budget // (TL * itemsize), sub))
    # 3) Batch coarsening only once a full (C, L) plane fits the budget.
    if TC == C and TL == L:
        TB = int(max(1, min(N, budget // max(1, C * L * itemsize))))
    else:
        TB = 1
    # Keep >= 2 blocks on the (parallel) batch axis when possible so both
    # v7x TensorCores get work even after aggressive coarsening.
    if N > 1 and TB >= N and TC >= C and TL >= L:
        TB = (N + 1) // 2
    return TB, TC, TL


def noise_injection_images(image, noise, weight, *, donate_image=False):
    """image: (N, C, H, W); noise: broadcastable to image; weight: (1, C, 1, 1)."""
    N, C, H, W = image.shape
    L = H * W

    # --- Normalize noise to 4D (PyTorch right-aligned broadcasting). --------
    noise = jnp.asarray(noise)
    nshape = (1,) * (4 - noise.ndim) + tuple(noise.shape)
    noise = noise.reshape(nshape)
    nN, nC, nH, nW = noise.shape
    assert nN in (1, N) and nC in (1, C), "noise not broadcastable to image"
    if (nH, nW) != (H, W):
        # Rare spatial-broadcast case: materialize only to the noise's own
        # batch/channel extent, never the full N*C*H*W image.
        noise = jnp.broadcast_to(noise, (nN, nC, H, W))

    # --- Lane-dense 3D views: (batch, channel, H*W). ------------------------
    img3 = image.reshape(N, C, L)
    noise3 = noise.reshape(nN, nC, L)
    w3 = jnp.asarray(weight).reshape(1, C, 1)

    # --- Tile selection. -----------------------------------------------------
    itemsize = max(jnp.dtype(image.dtype).itemsize, jnp.dtype(noise.dtype).itemsize)
    img_isz = jnp.dtype(image.dtype).itemsize
    sub = {4: 8, 2: 16, 1: 32}.get(img_isz, 8)  # packed-sublane granularity
    budget, vmem_limit = _vmem_budget()
    TB, TC, TL = _select_tiles(N, C, L, itemsize, sub, budget)

    nTB = TB if nN == N else 1
    nTC = TC if nC == C else 1

    # --- Grid ordering: if noise is batch-broadcast, iterate the batch axis
    # innermost so the noise block index is constant along it and the tile
    # stays resident in VMEM (no redundant per-batch re-reads). ---------------
    batch_inner = (nN == 1) and (N > TB)
    if batch_inner:
        grid = (pl.cdiv(C, TC), pl.cdiv(L, TL), pl.cdiv(N, TB))
        img_idx = lambda c, l, n: (n, c, l)
        nz_idx = lambda c, l, n: (0, c if nC == C else 0, l)
        w_idx = lambda c, l, n: (0, c, 0)
    else:
        grid = (pl.cdiv(N, TB), pl.cdiv(C, TC), pl.cdiv(L, TL))
        img_idx = lambda n, c, l: (n, c, l)
        nz_idx = lambda n, c, l: (n if nN == N else 0, c if nC == C else 0, l)
        w_idx = lambda n, c, l: (0, c, 0)

    img_spec = pl.BlockSpec((TB, TC, TL), img_idx)
    noise_spec = pl.BlockSpec((nTB, nTC, TL), nz_idx)
    w_spec = pl.BlockSpec((1, TC, 1), w_idx)

    out3 = pl.pallas_call(
        _noise_inject_kernel,
        out_shape=jax.ShapeDtypeStruct((N, C, L), image.dtype),
        grid_spec=pltpu.PrefetchScalarGridSpec(
            num_scalar_prefetch=0,
            grid=grid,
            in_specs=[img_spec, noise_spec, w_spec],
            out_specs=img_spec,
        ),
        compiler_params=pltpu.CompilerParams(
            dimension_semantics=("parallel", "parallel", "parallel"),
            vmem_limit_bytes=vmem_limit,
        ),
        input_output_aliases=({0: 0} if donate_image else {}),
    )(img3, noise3, w3)
    return out3.reshape(N, C, H, W)


if __name__ == "__main__":
    key = jax.random.PRNGKey(0)
    k_img, k_noise, k_noise_c, k_noise_n = jax.random.split(key, 4)

    N, C, H, W = 2, 4, 16, 16
    image = jax.random.normal(k_img, (N, C, H, W), dtype=jnp.float32)
    noise = jax.random.normal(k_noise, (N, C, H, W), dtype=jnp.float32)

    # Parameter init exactly as the module: zeros of shape (1, C, 1, 1).
    weight = jnp.zeros((1, C, 1, 1), dtype=jnp.float32)
    out = jax.block_until_ready(noise_injection_images(image, noise, weight))
    ref = image + weight * noise
    assert out.shape == (N, C, H, W)
    assert jnp.allclose(out, ref, atol=1e-6), "mismatch vs reference"

    # Nonzero weight to exercise the scaling path.
    weight2 = jnp.arange(C, dtype=jnp.float32).reshape(1, C, 1, 1) * 0.1
    out2 = jax.block_until_ready(noise_injection_images(image, noise, weight2))
    ref2 = image + weight2 * noise
    assert jnp.allclose(out2, ref2, atol=1e-6), "mismatch (nonzero weight)"

    # Channel-broadcast noise (N, 1, H, W): broadcast via index_map, no HBM blow-up.
    noise_c = jax.random.normal(k_noise_c, (N, 1, H, W), dtype=jnp.float32)
    out3 = jax.block_until_ready(noise_injection_images(image, noise_c, weight2))
    ref3 = image + weight2 * noise_c
    assert jnp.allclose(out3, ref3, atol=1e-6), "mismatch (channel-broadcast noise)"

    # Batch-broadcast noise (1, C, H, W): exercises the reordered grid where the
    # batch axis is innermost and the noise tile stays resident in VMEM.
    noise_n = jax.random.normal(k_noise_n, (1, C, H, W), dtype=jnp.float32)
    out4 = jax.block_until_ready(noise_injection_images(image, noise_n, weight2))
    ref4 = image + weight2 * noise_n
    assert jnp.allclose(out4, ref4, atol=1e-6), "mismatch (batch-broadcast noise)"

    # bf16 activations: exercises the dtype-dependent sublane packing path.
    image_bf = image.astype(jnp.bfloat16)
    noise_bf = noise.astype(jnp.bfloat16)
    out5 = jax.block_until_ready(noise_injection_images(image_bf, noise_bf, weight2))
    ref5 = (image_bf.astype(jnp.float32)
            + weight2 * noise_bf.astype(jnp.float32)).astype(jnp.bfloat16)
    assert out5.dtype == jnp.bfloat16
    assert jnp.allclose(out5.astype(jnp.float32), ref5.astype(jnp.float32),
                        atol=2e-2), "mismatch (bf16)"

    print("KERNEL_OK")
</pallas_src>

<mosaic_0001>
module attributes {stable_mosaic.version = 11 : i64} {
  func.func @_noise_inject_kernel(%arg0: i32, %arg1: i32, %arg2: i32, %arg3: memref<1x4x256xf32, #tpu.memory_space<vmem>>, %arg4: memref<1x4x256xf32, #tpu.memory_space<vmem>>, %arg5: memref<1x4x1xf32, #tpu.memory_space<vmem>>, %arg6: memref<1x4x256xf32, #tpu.memory_space<vmem>>) attributes {dimension_semantics = [#tpu.dimension_semantics<parallel>, #tpu.dimension_semantics<parallel>, #tpu.dimension_semantics<parallel>], iteration_bounds = array<i64: 2, 1, 1>, scalar_prefetch = 0 : i64, scratch_operands = 0 : i64, tpu.core_type = #tpu.core_type<tc>, window_params = [{transform_indices = @transform_0, window_bounds = array<i64: 1, 4, 256>}, {transform_indices = @transform_1, window_bounds = array<i64: 1, 4, 256>}, {transform_indices = @transform_2, window_bounds = array<i64: 1, 4, 1>}, {transform_indices = @transform_3, window_bounds = array<i64: 1, 4, 256>}]} {
    %c0 = arith.constant 0 : index
    %c0_0 = arith.constant 0 : index
    %c0_1 = arith.constant 0 : index
    %0 = vector.load %arg3[%c0, %c0_0, %c0_1] : memref<1x4x256xf32, #tpu.memory_space<vmem>>, vector<1x4x256xf32>
    %c0_2 = arith.constant 0 : index
    %c0_3 = arith.constant 0 : index
    %c0_4 = arith.constant 0 : index
    %1 = vector.load %arg5[%c0_2, %c0_3, %c0_4] : memref<1x4x1xf32, #tpu.memory_space<vmem>>, vector<1x4x1xf32>
    %c0_5 = arith.constant 0 : index
    %c0_6 = arith.constant 0 : index
    %c0_7 = arith.constant 0 : index
    %2 = vector.load %arg4[%c0_5, %c0_6, %c0_7] : memref<1x4x256xf32, #tpu.memory_space<vmem>>, vector<1x4x256xf32>
    %3 = vector.broadcast %1 : vector<1x4x1xf32> to vector<1x4x256xf32>
    %4 = arith.mulf %3, %2 : vector<1x4x256xf32>
    %5 = arith.addf %0, %4 : vector<1x4x256xf32>
    %c0_8 = arith.constant 0 : index
    %c0_9 = arith.constant 0 : index
    %c0_10 = arith.constant 0 : index
    %6 = vector.load %arg6[%c0_8, %c0_9, %c0_10] : memref<1x4x256xf32, #tpu.memory_space<vmem>>, vector<1x4x256xf32>
    tpu.vector_store %arg6[%c0_8, %c0_9, %c0_10], %5 {strides = array<i32>} : memref<1x4x256xf32, #tpu.memory_space<vmem>>, vector<1x4x256xf32>,
    return
  }
  func.func @transform_0(%arg0: i32, %arg1: i32, %arg2: i32) -> (i32, i32, i32) {
    %c0_i32 = arith.constant 0 : i32
    return %arg0, %arg1, %arg2 : i32, i32, i32
  }
  func.func @transform_1(%arg0: i32, %arg1: i32, %arg2: i32) -> (i32, i32, i32) {
    %c0_i32 = arith.constant 0 : i32
    return %arg0, %arg1, %arg2 : i32, i32, i32
  }
  func.func @transform_2(%arg0: i32, %arg1: i32, %arg2: i32) -> (i32, i32, i32) {
    %c0_i32 = arith.constant 0 : i32
    %c0_i32_0 = arith.constant 0 : i32
    %c0_i32_1 = arith.constant 0 : i32
    return %c0_i32, %arg1, %c0_i32_0 : i32, i32, i32
  }
  func.func @transform_3(%arg0: i32, %arg1: i32, %arg2: i32) -> (i32, i32, i32) {
    %c0_i32 = arith.constant 0 : i32
    return %arg0, %arg1, %arg2 : i32, i32, i32
  }
}

</mosaic_0001>

<bundles_post_ra>
// kernel: tpu_custom_call.1
= control target key start
LH: loop header
LB: loop body
LE: loop exit
PB: predicated region body
PF: predicated region fallthrough
CT: control target
= control target key end

     0   :  { %8 = vsyncpa [#allocation3], 0  ;;  %s864_s0 = inlined_call_operand.hbm [shape: f32[2,4,256], index: 0, kind: input, shape index: {}]   ;;  %s865_s1 = inlined_call_operand.hbm [shape: f32[2,4,256], index: 1, kind: input, shape index: {}]   ;;  %s866_s2 = inlined_call_operand.vmem [shape: f32[1,4,1], index: 2, kind: input, shape index: {}]   ;;  %s867_s3 = inlined_call_operand.hbm [shape: f32[2,4,256], index: 3, kind: output, shape index: {}]  }
   0x1   :  { %10 = vsyncpa [#allocation3 + $0x1], 0 }
   0x2   :  { %11 = vsyncpa [#allocation6], 0 }
   0x3   :  { %13 = vsyncpa [#allocation6 + $0x1], 0 }
   0x4   :  { %14 = vsyncpa [#allocation4], 0 }
   0x5   :  { %16 = vsyncpa [#allocation4 + $0x1], 0  ;;  %s728_s12 = smov 0   ;;  %s730_s13 = smov 0  }
   0x6   :  { %s732_s14 = smov 0   ;;  %s734_s15 = smov 0  }
   0x7   :  { %s736_s16 = smov 0   ;;  %s738_s17 = smov 0  }
   0x8 LB: > { %s467_s18 = sadd.s32 4294967295, %s705_s17   ;;  %s468_s19 = sadd.s32 4294967294, %s705_s17   ;;  %s705_s17 = sphi %s738_s17, %s22_s17   ;;  %s701_s16 = sphi %s736_s16, %s876_s16   ;;  %s697_s15 = sphi %s734_s15, %s875_s15   ;;  %s693_s14 = sphi %s732_s14, %s874_s14   ;;  %s689_s13 = sphi %s730_s13, %s873_s13   ;;  %s685_s12 = sphi %s728_s12, %s872_s12  }
   0x9   : > { %s41_s20 = sadd.s32 1, %s701_s16  ;;  %s52_s21 = sadd.s32 1, %s693_s14 }
   0xa   : > { %p43_p0 = scmp.ge.s32.totalorder %s41_s20, 2  ;;  %p59_p1 = scmp.ne.s32.totalorder %s693_s14, %s689_s13 }
   0xb   : > { %p60_p2 = scmp.eq.s32.totalorder %s705_s17, 0  ;;  %p65_p3 = scmp.ne.s32.totalorder %s689_s13, %s685_s12 }
   0xc   : > { %s878_s20 = smov (%p43_p0, %s41_s20), 0  ;;  %p66_p5 = scmp.eq.s32.totalorder %s467_s18, 0 }
   0xd   : > { %p769_p4 = por %p60_p2, %p59_p1  ;;  %s45_s23 = ssub.s32 %s701_s16, %s878_s20 }
   0xe   : > { %p149_p6 = scmp.eq.s32.totalorder %s467_s18, 1  ;;  %p50_p7 = scmp.eq.s32.totalorder %s45_s23, 0 }
   0xf   : > { %p775_p8 = por %p66_p5, %p65_p3  ;;  %p155_p10 = scmp.eq.s32.totalorder %s468_s19, 1 }
  0x10   : > { %p779_p9 = por %p149_p6, %p59_p1  ;;  %p471_p12 = scmp.ge.s32.totalorder %s705_s17, 2 }
  0x11   : > { %s784_s26 = scalar_select %p50_p7, %s693_s14, %s52_s21  }
  0x12   : > { %p786_p11 = por %p155_p10, %p65_p3  ;;  %p507_p13 = scmp.lt.s32.totalorder %s705_s17, 2 }
  0x13   : > { %s182_s28 = sand.u32 1, %s693_s14   ;;  %s487_s30 = sshll.u32 %s701_s16, 3 }
  0x14   : > { %s472_s29 = sshll.u32 %s182_s28, 3  ;;  %s195_s6 = scalar_lea.hbm %s864_s0, %s487_s30 }
  0x15   : > { %s186_s7 = scalar_lea.vmem [#allocation2], %s472_s29  ;;  %s197_s9 = sshll.u32 %s195_s6, 4  ;;  %s198_s9 = int_to_ptr.hbm [resolvable:$true] %s197_s9 }
  0x16   : > { %s199_s8 = sshll.u32 %s186_s7, 4  ;;  %p497_p0 = pnand %p507_p13, %p769_p4  ;;  %s200_s8 = int_to_ptr.vmem [resolvable:$true] %s199_s8 }
  0x17   : > { %p478_p1 = scmp.ge.s32.totalorder %s705_s17, 1  ;;  %p228_p2 = scmp.lt.s32.totalorder %s705_s17, 3 }
  0x18   : > { %s183_s10 = scalar_lea.sflag [#allocation3], %s182_s28  ;;  %s219_s19 = scalar_lea.hbm %s865_s1, %s487_s30 }
  0x19   : > { %499 = dma.hbm_to_vmem [thread:$0]  (!%p497_p0), %s198_s9, 128, %s200_s8, %s183_s10  }
  0x1a   : > { %p229_p3 = pnand %p478_p1, %p228_p2  ;;  %s210_s21 = scalar_lea.vmem [#allocation5], %s472_s29 }
  0x1b   : > { %s223_s23 = sshll.u32 %s210_s21, 4  ;;  %s221_s4 = sshll.u32 %s219_s19, 4  ;;  %s224_s23 = int_to_ptr.vmem [resolvable:$true] %s223_s23  ;;  %s222_s4 = int_to_ptr.hbm [resolvable:$true] %s221_s4 }
  0x1c   : > { %s207_s5 = scalar_lea.sflag [#allocation6], %s182_s28  ;;  %232 = sbr.rel (%p229_p3) target bundleno = 163 (0xa3), region = 32 }
  0x1d   : > { %502 = dma.hbm_to_vmem [thread:$0]  (!%p497_p0), %s222_s4, 128, %s224_s23, %s207_s5  }
  0x1e   : > { %s805_s22 = sand.u32 (!%p229_p3), 1, %s689_s13  }
  0x1f   : > { %s808_s6 = sshll.u32 (!%p229_p3), %s805_s22, 3  ;;  %s235_s7 = scalar_lea.sflag (!%p229_p3), [#allocation3], %s805_s22 }
  0x20   : > { %s238_s8 = scalar_lea.vmem (!%p229_p3), [#allocation2], %s808_s6 }
  0x21   : > { %672 = dma.done.wait (%p775_p8), %s235_s7, 128  }
  0x22   : > { %674 = vsyncadd (%p775_p8), %s235_s7, 4294967168  ;;  %s245_s28 = scalar_lea.sflag [#allocation6], %s805_s22  ;;  %s248_s29 = scalar_lea.vmem [#allocation5], %s808_s6 }
  0x23   : > { %676 = dma.done.wait (%p775_p8), %s245_s28, 128  }
  0x24   : > { %678 = vsyncadd (%p775_p8), %s245_s28, 4294967168  ;;  %v707_v0 = vmov 0   ;;  %v290_v1 = vld [vmem:[%s248_s29] sm:$0xff]  ;;  %s489_s10 = sshll.u32 %s697_s15, 3  ;;  %vm307_vm0 = vcmask 1043456   ;;  %v288_v7 = vld [vmem:[%s238_s8] sm:$0xff] }
  0x25   : > { %558 = vset.pattern.permute.xlu0 %v707_v0  ;;  %v289_v2 = vld [vmem:[%s866_s2] sm:$0xf]  ;;  %297 = vst [vmem:[#allocation1] ss:$2 sm:$0xff] %v290_v1  ;;  %s328_s24 = scalar_lea.hbm %s867_s3, %s489_s10  ;;  %s280_s19 = scalar_lea.vmem [#allocation7], %s808_s6 }
  0x26   : > { %293 = vperm.xlu0 %558, %v289_v2   ;;  %s330_s21 = sshll.u32 %s280_s19, 4  ;;  %s332_s23 = sshll.u32 %s328_s24, 4  ;;  %s331_s21 = int_to_ptr.vmem [resolvable:$true] %s330_s21  ;;  %s333_s23 = int_to_ptr.hbm [resolvable:$true] %s332_s23 }
  0x27   : > { %s313_s15 = scalar_lea.sflag [#allocation4], %s805_s22  ;;  %s633_s4 = sshra.s32 %s333_s23, 4  ;;  %s634_s4 = int_to_ptr.hbm [resolvable:$true] %s633_s4 }
  0x28   : > { %s635_s5 = scalar_lea.hbm %s634_s4, 8  ;;  %s639_s28 = scalar_lea.hbm %s867_s3, 16 }
  0x29   : > { %p636_p4 = scmp.ne.s32.totalorder %s634_s4, %s635_s5  ;;  %p640_p7 = scmp.lt.s32.totalorder %s634_s4, %s867_s3 }
  0x2a   : > { %p641_p8 = scmp.lt.s32.totalorder %s639_s28, %s635_s5 }
  0x2b   : > { %p637_p5 = pnand %p636_p4, %p779_p9 }
  0x2c   : > { %v299_v3 = vld.sshfl [vmem:[#allocation1 + $0x8] sm:$0xff pattern:$0x75316420]  ;;  %v298_v4 = vld.sshfl [vmem:[#allocation1] sm:$0xff pattern:$0x75316420]  ;;  %p642_p10 = por %p641_p8, %p640_p7 }
  0x2d   : > { %p638_p6 = pneg %p637_p5 }
  0x2f   : > { %p643_p13 = pnand %p642_p10, %p638_p6 }
  0x98   : > { %v294_v5 = vpop.permute.xlu0 %293 }
  0x99   : > { %v303_v6 = vmul.f32 %v299_v3, %v294_v5  ;;  %v302_v8 = vmul.f32 %v298_v4, %v294_v5 }
  0x9b   : > { %v306_v9 = vrot.slane %v303_v6, 4 }
  0x9d   : > { %v308_v10 = vsel %vm307_vm0, %v302_v8, %v306_v9 }
  0x9e   : > { %v310_v11 = vadd.f32 %v308_v10, %v288_v7 }
  0xa0   : > { %311 = vst [vmem:[%s280_s19] sm:$0xff] %v310_v11 }
  0xa1   : > { %646 = shalt.err (!%p643_p13)
}
  0xa2   : > { %494 = dma.vmem_to_hbm [thread:$0]  (%p779_p9), %s331_s21, 128, %s333_s23, %s313_s15  }
  0xa3 PF: > { %s344_s22 = sand.u32 1, %s685_s12   ;;  %p504_p0 = pnand %p471_p12, %p786_p11 }
  0xa4   : > { %s345_s30 = scalar_lea.sflag [#allocation4], %s344_s22 }
  0xa5   : > { %p505_p1 = pneg %p504_p0 }
  0xa7   : > { %680 = dma.done.wait (%p505_p1), %s345_s30, 128  }
  0xa8   : > { %682 = vsyncadd (%p505_p1), %s345_s30, 4294967168  ;;  %s22_s17 = sadd.s32 1, %s705_s17   ;;  %s872_s12 = smov %s689_s13 }
  0xa9   : > { %p19_p2 = scmp.ge.s32.totalorder %s22_s17, 4   ;;  %s873_s13 = smov %s693_s14 }
  0xaa   : > { %s874_s14 = smov %s784_s26  ;;  %s875_s15 = smov %s701_s16 }
  0xab   : > { %s876_s16 = smov %s878_s20  ;;  %21 = sbr.rel (!%p19_p2) target bundleno = 8 (0x8), region = 93 }
  0xb0   :  { %351 = vsyncpa [#allocation3], 1 }
  0xb1   :  { %353 = vsyncpa [#allocation3 + $0x1], 1 }
  0xb2   :  { %354 = vsyncpa [#allocation6], 1 }
  0xb3   :  { %356 = vsyncpa [#allocation6 + $0x1], 1 }
  0xb4   :  { %357 = vsyncpa [#allocation4], 1 }
  0xb5   :  { %359 = vsyncpa [#allocation4 + $0x1], 1 }

</bundles_post_ra>
